<compile_context>
chip_gen: v7x
topology: tpu7x:2x2x1
jax: 0.10.0
libtpu: 0.0.40
codegen_flags: <defaults>
</compile_context>

<pallas_src>
import functools

import jax
import jax.numpy as jnp
from jax import lax
from jax.experimental import pallas as pl
from jax.experimental.pallas import tpu as pltpu


def am_softmax_kernel(label_ref, emb_ref, w_ref, out_ref, sq_ref, *, m, s, tile_c):
    """Grid = (C_tiles [parallel], D_tiles [arbitrary/reduction, last])."""
    # Grid coordinates read ONCE, outside any pl.when body.
    j = pl.program_id(0)                       # C tile index
    k = pl.program_id(1)                       # D reduction step
    nk = pl.num_programs(1)

    w = w_ref[...]                             # (TILE_D, TILE_C) f32, HBM stream
    emb = emb_ref[k]                           # (B, TILE_D), resident in VMEM

    # Partial matmul (MXU) + partial per-column squared norms (VPU/XLU, hidden
    # under the W DMA / MXU time).
    part = jnp.dot(emb, w, preferred_element_type=jnp.float32)      # (B, TILE_C)
    part_sq = jnp.sum(w * w, axis=0, keepdims=True)                 # (1, TILE_C)

    @pl.when(k == 0)
    def _first():                              # fold init into the first write
        out_ref[...] = part
        sq_ref[...] = part_sq

    @pl.when(k > 0)
    def _accumulate():
        out_ref[...] += part
        sq_ref[...] += part_sq

    @pl.when(k == nk - 1)
    def _epilogue():
        # Guard against all-zero (padded) columns; real columns have norm ~1.
        inv_norm = lax.rsqrt(jnp.maximum(sq_ref[...], 1e-30))       # (1, TILE_C), EUP
        cos = jnp.clip(out_ref[...] * inv_norm, -1.0, 1.0)          # (B, TILE_C)

        b, ct = cos.shape
        col0 = j * tile_c                                           # global column offset
        col_ids = lax.broadcasted_iota(jnp.int32, (b, ct), 1) + col0
        one_hot = (col_ids == label_ref[...]).astype(jnp.float32)   # label_ref: (B, 1)

        # output = s * where(one_hot, cos - m, cos)  ==  s*cos - (s*m)*one_hot
        out_ref[...] = (s * cos - (s * m) * one_hot).astype(out_ref.dtype)


def _round_up(x, n):
    return ((x + n - 1) // n) * n


def _pick_tile(dim, target, granule=128):
    """Largest multiple of `granule` <= target that divides `dim`.
    `dim` must already be a multiple of `granule`."""
    t = (min(target, dim) // granule) * granule
    while t > granule:
        if dim % t == 0:
            return t
        t -= granule
    return granule


def am_softmax_forward(embeddings, kernel, label, *, m=0.35, s=30.0,
                       tile_c=2048, tile_d=512):
    """AM-Softmax forward. embeddings (B, D) f32, kernel (D, C) f32, label (B,) int."""
    B, D = embeddings.shape
    D2, C = kernel.shape
    assert D == D2
    embeddings = embeddings.astype(jnp.float32)
    kernel = kernel.astype(jnp.float32)
    label2d = label.reshape(B, 1).astype(jnp.int32)

    # Pad C and D up to 128-multiples: zero rows don't change dot products or
    # column norms; padded output columns are trimmed below.
    C_pad = _round_up(C, 128)
    D_pad = _round_up(D, 128)
    if D_pad != D:
        embeddings = jnp.pad(embeddings, ((0, 0), (0, D_pad - D)))
        kernel = jnp.pad(kernel, ((0, D_pad - D), (0, 0)))
    if C_pad != C:
        kernel = jnp.pad(kernel, ((0, 0), (0, C_pad - C)))

    # Tile sizes (multiples of 128). Prefer >=2 C tiles so the "parallel" C axis
    # can shard across both TensorCores on v7x.
    tc = _pick_tile(C_pad, min(tile_c, max(128, C_pad // 2)))
    td = _pick_tile(D_pad, tile_d)
    n_k = D_pad // td

    # Embeddings as a resident (n_k, B, td) slab: single HBM load for the whole
    # kernel, first-axis dynamic indexing inside (no dynamic lane-dim slice).
    emb3 = jnp.transpose(embeddings.reshape(B, n_k, td), (1, 0, 2))

    # Explicit VMEM budget (v5e scoped default is 16 MiB; v7x physical is 64 MiB).
    est_vmem = (2 * td * tc * 4        # W tile, double-buffered (dominant stream)
                + 2 * B * tc * 4       # output/accumulator block, double-buffered
                + 2 * B * D_pad * 4    # resident embeddings
                + 2 * B * 4            # labels
                + tc * 4               # per-column sum(w^2) scratch
                + (1 << 20))           # slack
    vmem_limit = min(max(int(est_vmem * 1.25), 16 << 20), 64 << 20)

    kernel_fn = functools.partial(am_softmax_kernel, m=m, s=s, tile_c=tc)

    out = pl.pallas_call(
        kernel_fn,
        out_shape=jax.ShapeDtypeStruct((B, C_pad), jnp.float32),
        grid_spec=pltpu.PrefetchScalarGridSpec(
            num_scalar_prefetch=0,
            grid=(C_pad // tc, n_k),          # (C tiles, D reduction tiles: last)
            in_specs=[
                # label: full array, same block every step -> stays resident
                pl.BlockSpec((B, 1), lambda j, k: (0, 0)),
                # embeddings: full (n_k, B, td) slab, constant block index -> one DMA
                pl.BlockSpec((n_k, B, td), lambda j, k: (0, 0, 0)),
                # weights: (td, tc) tile, the streamed / double-buffered HBM load
                pl.BlockSpec((td, tc), lambda j, k: (k, j)),
            ],
            out_specs=pl.BlockSpec((B, tc), lambda j, k: (0, j)),
            scratch_shapes=[
                pltpu.VMEM((1, tc), jnp.float32),   # per-column sum(w^2) accumulator
            ],
        ),
        compiler_params=pltpu.CompilerParams(
            dimension_semantics=("parallel", "arbitrary"),
            vmem_limit_bytes=vmem_limit),
    )(label2d, emb3, kernel)

    return out[:, :C] if C_pad != C else out


def init_am_softmax_kernel(key, in_features, out_features):
    """Deterministic emulation of:
       torch.Tensor(in, out).uniform_(-1, 1).renorm_(2, 1, 1e-05).mul_(100000.0)
    renorm_ along dim=1 clamps each column's L2 norm to <= 1e-5, then *1e5
    makes each column (approximately) unit norm."""
    w = jax.random.uniform(key, (in_features, out_features),
                           minval=-1.0, maxval=1.0, dtype=jnp.float32)
    col_norm = jnp.linalg.norm(w, axis=0, keepdims=True)
    scale = jnp.where(col_norm > 1e-5, 1e-5 / col_norm, 1.0)
    return w * scale * 1e5


def reference_forward(embeddings, kernel, label, m=0.35, s=30.0):
    w_norm = kernel / jnp.linalg.norm(kernel, axis=0, keepdims=True)
    cos = jnp.clip(jnp.dot(embeddings, w_norm, precision="highest"), -1.0, 1.0)
    one_hot = jax.nn.one_hot(label, kernel.shape[1], dtype=jnp.bool_)
    return jnp.where(one_hot, cos - m, cos) * s


# TODO(synk): the device_id!=None model-parallel branch (torch.chunk of W across
# GPUs + cross-device concat) is not translated; this is the single-device path.

if __name__ == "__main__":
    key = jax.random.PRNGKey(0)
    k_emb, k_w, k_lbl = jax.random.split(key, 3)

    B = 8              # batch (multiple of 8 — f32 sublane tile)
    in_features = 256
    out_features = 512

    embeddings = jax.random.normal(k_emb, (B, in_features), dtype=jnp.float32)
    embeddings = embeddings / jnp.linalg.norm(embeddings, axis=1, keepdims=True)
    weight = init_am_softmax_kernel(k_w, in_features, out_features)
    label = jax.random.randint(k_lbl, (B,), 0, out_features, dtype=jnp.int32)

    # Small tiles so the test exercises both C tiling (global column offset for the
    # margin) and the tiled D reduction / in-place accumulation path: grid=(2, 2).
    out = am_softmax_forward(embeddings, weight, label, m=0.35, s=30.0,
                             tile_c=256, tile_d=128)
    out = jax.block_until_ready(out)

    ref = reference_forward(embeddings, weight, label, m=0.35, s=30.0)
    assert out.shape == (B, out_features)
    max_err = float(jnp.max(jnp.abs(out - ref)))
    assert jnp.allclose(out, ref, atol=1e-3, rtol=1e-3), max_err

    print("KERNEL_OK")
</pallas_src>

<mosaic_0001>
module attributes {stable_mosaic.version = 11 : i64} {
  func.func @am_softmax_kernel(%arg0: i32, %arg1: i32, %arg2: memref<8x1xi32, #tpu.memory_space<vmem>>, %arg3: memref<2x8x128xf32, #tpu.memory_space<vmem>>, %arg4: memref<128x256xf32, #tpu.memory_space<vmem>>, %arg5: memref<8x256xf32, #tpu.memory_space<vmem>>, %arg6: memref<1x256xf32, #tpu.memory_space<vmem>>) attributes {dimension_semantics = [#tpu.dimension_semantics<parallel>, #tpu.dimension_semantics<arbitrary>], iteration_bounds = array<i64: 2, 2>, scalar_prefetch = 0 : i64, scratch_operands = 1 : i64, tpu.core_type = #tpu.core_type<tc>, window_params = [{pipeline_mode = #tpu.pipeline_mode<synchronous>, transform_indices = @transform_0, window_bounds = array<i64: 8, 1>}, {pipeline_mode = #tpu.pipeline_mode<synchronous>, transform_indices = @transform_1, window_bounds = array<i64: 2, 8, 128>}, {transform_indices = @transform_2, window_bounds = array<i64: 128, 256>}, {transform_indices = @transform_3, window_bounds = array<i64: 8, 256>}]} {
    %c0 = arith.constant 0 : index
    %c0_0 = arith.constant 0 : index
    %0 = vector.load %arg4[%c0, %c0_0] : memref<128x256xf32, #tpu.memory_space<vmem>>, vector<128x256xf32>
    %1 = arith.index_cast %arg1 : i32 to index
    %c0_1 = arith.constant 0 : index
    %c0_2 = arith.constant 0 : index
    %2 = vector.load %arg3[%1, %c0_1, %c0_2] : memref<2x8x128xf32, #tpu.memory_space<vmem>>, vector<1x8x128xf32>
    %3 = vector.shape_cast %2 : vector<1x8x128xf32> to vector<8x128xf32>
    %cst = arith.constant dense<0.000000e+00> : vector<8x256xf32>
    %4 = tpu.matmul %3, %0, %cst {dimension_numbers = #tpu.dot_dimension_numbers<[1], [0], [0], [1], [0, 0, 1, 1], [], []>} : vector<8x128xf32>, vector<128x256xf32>, vector<8x256xf32> -> vector<8x256xf32>
    %5 = arith.mulf %0, %0 : vector<128x256xf32>
    %cst_3 = arith.constant dense<0.000000e+00> : vector<256xf32>
    %6 = vector.multi_reduction <add>, %5, %cst_3 [0] : vector<128x256xf32> to vector<256xf32>
    %7 = vector.shape_cast %6 : vector<256xf32> to vector<1x256xf32>
    %c0_i32 = arith.constant 0 : i32
    %8 = arith.cmpi eq, %arg1, %c0_i32 : i32
    %9 = arith.extui %8 : i1 to i32
    %c0_i32_4 = arith.constant 0 : i32
    %10 = arith.cmpi ne, %9, %c0_i32_4 : i32
    scf.if %10 {
      %c0_8 = arith.constant 0 : index
      %c0_9 = arith.constant 0 : index
      %17 = vector.load %arg5[%c0_8, %c0_9] : memref<8x256xf32, #tpu.memory_space<vmem>>, vector<8x256xf32>
      tpu.vector_store %arg5[%c0_8, %c0_9], %4 {strides = array<i32>} : memref<8x256xf32, #tpu.memory_space<vmem>>, vector<8x256xf32>,
      %c0_10 = arith.constant 0 : index
      %c0_11 = arith.constant 0 : index
      %18 = vector.load %arg6[%c0_10, %c0_11] : memref<1x256xf32, #tpu.memory_space<vmem>>, vector<1x256xf32>
      tpu.vector_store %arg6[%c0_10, %c0_11], %7 {strides = array<i32>} : memref<1x256xf32, #tpu.memory_space<vmem>>, vector<1x256xf32>,
    } else {
    }
    %c0_i32_5 = arith.constant 0 : i32
    %11 = arith.cmpi sgt, %arg1, %c0_i32_5 : i32
    %12 = arith.extui %11 : i1 to i32
    %c0_i32_6 = arith.constant 0 : i32
    %13 = arith.cmpi ne, %12, %c0_i32_6 : i32
    scf.if %13 {
      %c0_8 = arith.constant 0 : index
      %c0_9 = arith.constant 0 : index
      %17 = vector.load %arg5[%c0_8, %c0_9] : memref<8x256xf32, #tpu.memory_space<vmem>>, vector<8x256xf32>
      %18 = arith.addf %17, %4 : vector<8x256xf32>
      %c0_10 = arith.constant 0 : index
      %c0_11 = arith.constant 0 : index
      %19 = vector.load %arg5[%c0_10, %c0_11] : memref<8x256xf32, #tpu.memory_space<vmem>>, vector<8x256xf32>
      tpu.vector_store %arg5[%c0_10, %c0_11], %18 {strides = array<i32>} : memref<8x256xf32, #tpu.memory_space<vmem>>, vector<8x256xf32>,
      %c0_12 = arith.constant 0 : index
      %c0_13 = arith.constant 0 : index
      %20 = vector.load %arg6[%c0_12, %c0_13] : memref<1x256xf32, #tpu.memory_space<vmem>>, vector<1x256xf32>
      %21 = arith.addf %20, %7 : vector<1x256xf32>
      %c0_14 = arith.constant 0 : index
      %c0_15 = arith.constant 0 : index
      %22 = vector.load %arg6[%c0_14, %c0_15] : memref<1x256xf32, #tpu.memory_space<vmem>>, vector<1x256xf32>
      tpu.vector_store %arg6[%c0_14, %c0_15], %21 {strides = array<i32>} : memref<1x256xf32, #tpu.memory_space<vmem>>, vector<1x256xf32>,
    } else {
    }
    %c1_i32 = arith.constant 1 : i32
    %14 = arith.cmpi eq, %arg1, %c1_i32 : i32
    %15 = arith.extui %14 : i1 to i32
    %c0_i32_7 = arith.constant 0 : i32
    %16 = arith.cmpi ne, %15, %c0_i32_7 : i32
    scf.if %16 {
      %c0_8 = arith.constant 0 : index
      %c0_9 = arith.constant 0 : index
      %17 = vector.load %arg6[%c0_8, %c0_9] : memref<1x256xf32, #tpu.memory_space<vmem>>, vector<1x256xf32>
      %cst_10 = arith.constant 1.000000e-30 : f32
      %18 = vector.broadcast %cst_10 : f32 to vector<1x256xf32>
      %19 = arith.maximumf %17, %18 : vector<1x256xf32>
      %20 = math.rsqrt %19 : vector<1x256xf32>
      %c0_11 = arith.constant 0 : index
      %c0_12 = arith.constant 0 : index
      %21 = vector.load %arg5[%c0_11, %c0_12] : memref<8x256xf32, #tpu.memory_space<vmem>>, vector<8x256xf32>
      %22 = vector.broadcast %20 : vector<1x256xf32> to vector<8x256xf32>
      %23 = arith.mulf %21, %22 : vector<8x256xf32>
      %cst_13 = arith.constant -1.000000e+00 : f32
      %cst_14 = arith.constant 1.000000e+00 : f32
      %24 = vector.broadcast %cst_13 : f32 to vector<8x256xf32>
      %25 = arith.maximumf %24, %23 : vector<8x256xf32>
      %26 = vector.broadcast %cst_14 : f32 to vector<8x256xf32>
      %27 = arith.minimumf %26, %25 : vector<8x256xf32>
      %c256_i32 = arith.constant 256 : i32
      %28 = arith.muli %arg0, %c256_i32 : i32
      %29 = tpu.iota {dimensions = array<i32: 1>} : vector<8x256xi32>
      %30 = vector.broadcast %28 : i32 to vector<8x256xi32>
      %31 = arith.addi %29, %30 : vector<8x256xi32>
      %c0_15 = arith.constant 0 : index
      %c0_16 = arith.constant 0 : index
      %32 = vector.load %arg2[%c0_15, %c0_16] : memref<8x1xi32, #tpu.memory_space<vmem>>, vector<8x1xi32>
      %33 = vector.broadcast %32 : vector<8x1xi32> to vector<8x256xi32>
      %34 = arith.cmpi eq, %31, %33 : vector<8x256xi32>
      %35 = arith.extui %34 : vector<8x256xi1> to vector<8x256xi32>
      %36 = arith.sitofp %35 : vector<8x256xi32> to vector<8x256xf32>
      %cst_17 = arith.constant 3.000000e+01 : f32
      %37 = vector.broadcast %cst_17 : f32 to vector<8x256xf32>
      %38 = arith.mulf %37, %27 : vector<8x256xf32>
      %cst_18 = arith.constant 1.050000e+01 : f32
      %39 = vector.broadcast %cst_18 : f32 to vector<8x256xf32>
      %40 = arith.mulf %39, %36 : vector<8x256xf32>
      %41 = arith.subf %38, %40 : vector<8x256xf32>
      %c0_19 = arith.constant 0 : index
      %c0_20 = arith.constant 0 : index
      %42 = vector.load %arg5[%c0_19, %c0_20] : memref<8x256xf32, #tpu.memory_space<vmem>>, vector<8x256xf32>
      tpu.vector_store %arg5[%c0_19, %c0_20], %41 {strides = array<i32>} : memref<8x256xf32, #tpu.memory_space<vmem>>, vector<8x256xf32>,
    } else {
    }
    return
  }
  func.func @transform_0(%arg0: i32, %arg1: i32) -> (i32, i32) {
    %c0_i32 = arith.constant 0 : i32
    %c0_i32_0 = arith.constant 0 : i32
    %c0_i32_1 = arith.constant 0 : i32
    return %c0_i32, %c0_i32_0 : i32, i32
  }
  func.func @transform_1(%arg0: i32, %arg1: i32) -> (i32, i32, i32) {
    %c0_i32 = arith.constant 0 : i32
    %c0_i32_0 = arith.constant 0 : i32
    %c0_i32_1 = arith.constant 0 : i32
    %c0_i32_2 = arith.constant 0 : i32
    return %c0_i32, %c0_i32_0, %c0_i32_1 : i32, i32, i32
  }
  func.func @transform_2(%arg0: i32, %arg1: i32) -> (i32, i32) {
    %c0_i32 = arith.constant 0 : i32
    return %arg1, %arg0 : i32, i32
  }
  func.func @transform_3(%arg0: i32, %arg1: i32) -> (i32, i32) {
    %c0_i32 = arith.constant 0 : i32
    %c0_i32_0 = arith.constant 0 : i32
    return %c0_i32, %arg0 : i32, i32
  }
}

</mosaic_0001>

<bundles_post_ra>
// kernel: tpu_custom_call.1
= control target key start
LH: loop header
LB: loop body
LE: loop exit
PB: predicated region body
PF: predicated region fallthrough
CT: control target
= control target key end

     0   :  { %s1356_s0 = inlined_call_operand.vmem [shape: s32[8,1], index: 0, kind: input, shape index: {}]   ;;  %s1357_s1 = inlined_call_operand.hbm [shape: f32[2,8,128], index: 1, kind: input, shape index: {}]   ;;  %s1358_s2 = inlined_call_operand.hbm [shape: f32[256,512], index: 2, kind: input, shape index: {}]   ;;  %s1359_s3 = inlined_call_operand.hbm [shape: f32[8,512], index: 3, kind: output, shape index: {}]  }
   0x1   :  { %1372 = sst [smem:[#allocation17_spill]] %s1357_s1 }
   0x2   :  { %8 = vsyncpa [#allocation4], 0 }
   0x3   :  { %9 = vsyncpa [#allocation7], 0 }
   0x4   :  { %11 = vsyncpa [#allocation7 + $0x1], 0 }
   0x5   :  { %12 = vsyncpa [#allocation5], 0 }
   0x6   :  { %14 = vsyncpa [#allocation5 + $0x1], 0  ;;  %s1039_s12 = smov 0   ;;  %s1041_s13 = smov 0  }
   0x7   :  { %s1043_s14 = smov 0   ;;  %s1045_s15 = smov 0  }
   0x8   :  { %s1047_s16 = smov 0   ;;  %s1049_s17 = smov 0  }
   0x9   :  { %s1051_s18 = smov 0   ;;  %s1053_s19 = smov 0  }
   0xa   :  { %s1055_s20 = smov 0   ;;  %s1057_s21 = smov 0  }
   0xb   :  { %s1059_s22 = smov 0  }
   0xc LB: > { %1373 = sst [smem:[#allocation12_spill]] %s964_s12  ;;  %s632_s23 = sadd.s32 4294967295, %s1004_s22   ;;  %s1004_s22 = sphi %s1059_s22, %s20_s22   ;;  %s1000_s21 = sphi %s1057_s21, %s1409_s21   ;;  %s996_s20 = sphi %s1055_s20, %s1408_s20   ;;  %s992_s19 = sphi %s1053_s19, %s1407_s19   ;;  %s988_s18 = sphi %s1051_s18, %s1406_s18   ;;  %s984_s17 = sphi %s1049_s17, %s1405_s17   ;;  %s980_s16 = sphi %s1047_s16, %s1404_s16   ;;  %s976_s15 = sphi %s1045_s15, %s1403_s15   ;;  %s972_s14 = sphi %s1043_s14, %s1402_s14   ;;  %s968_s13 = sphi %s1041_s13, %s1401_s13   ;;  %s964_s12 = sphi %s1039_s12, %s1400_s12  }
   0xd   : > { %1374 = sst [smem:[#allocation13_spill]] %s1004_s22  ;;  %s633_s24 = sadd.s32 4294967294, %s1004_s22  }
   0xe   : > { %p90_p0 = scmp.ne.s32.totalorder %s984_s17, %s980_s16  ;;  %p91_p1 = scmp.eq.s32.totalorder %s1004_s22, 0 }
   0xf   : > { %p96_p2 = scmp.ne.s32.totalorder %s980_s16, %s976_s15  ;;  %p1099_p3 = scmp.eq.s32.totalorder %s632_s23, 0 }
  0x10   : > { %p1104_p4 = por %p91_p1, %p90_p0  ;;  %p119_p5 = scmp.ne.s32.totalorder %s972_s14, %s968_s13 }
  0x11   : > { %s1375_s26 = scalar_select %p1099_p3, 1, 0 }
  0x12   : > { %p1112_p6 = por %p1099_p3, %p96_p2  ;;  %p120_p7 = scmp.eq.s32.totalorder %s632_s23, 3 }
  0x13   : > { %p125_p8 = scmp.ne.s32.totalorder %s968_s13, %s964_s12  ;;  %p126_p9 = scmp.eq.s32.totalorder %s633_s24, 3 }
  0x14   : > { %s1377_s29 = scalar_select %p1112_p6, 1, 0 }
  0x15   : > { %p1118_p10 = por %p120_p7, %p119_p5  ;;  %p634_p11 = scmp.ge.s32.totalorder %s1004_s22, 1 }
  0x16   : > { %p1123_p12 = por %p126_p9, %p125_p8  ;;  %p133_p13 = scmp.lt.s32.totalorder %s1004_s22, 5 }
  0x17   : > { %s1378_s30 = scalar_select %p1118_p10, 1, 0 }
  0x18   : > { %s1379_s4 = scalar_select %p1123_p12, 1, 0 }
  0x19   : > { %p1128_p0 = pnand %p634_p11, %p133_p13  ;;  %s1006_s6 = smov [#allocation3]  }
  0x1a   : > { %1380 = sst [smem:[#allocation14_spill]] %s1379_s4  ;;  %s148_s7 = sshll.u32 %s1006_s6, 4  ;;  %s149_s7 = int_to_ptr.vmem [resolvable:$true] %s148_s7 }
  0x1b   : > { %s1381_s5 = scalar_select %p1128_p0, 1, 0 }
  0x1c   : > { %p702_p1 = pneg %p1128_p0  ;;  %p715_p2 = scmp.lt.s32.totalorder %s1004_s22, 4 }
  0x1d   : > { %s1384_s1 = sld [smem:[#allocation17_spill]] }
  0x1e   : > { %p1137_p5 = pnand %p702_p1, %p1099_p3  ;;  %p1143_p7 = pnand %p715_p2, %p1104_p4 }
  0x20   : > { %s1383_s9 = scalar_select %p1143_p7, 1, 0 }
  0x21   : > { %p822_p9 = pneg %p1137_p5 }
  0x23   : > { %s820_s15 = scalar_lea.hbm %s1384_s1, 256 }
  0x24   : > { %p821_p8 = scmp.ne.s32.totalorder %s1384_s1, %s820_s15  ;;  %p827_p1 = scmp.lt.u32.totalorder %s820_s15, %s1384_s1 }
  0x26   : > { %p823_p11 = pnand %p822_p9, %p821_p8 }
  0x28   : > { %p824_p13 = pneg %p823_p11 }
  0x2a   : > { %p829_p4 = pnand %p827_p1, %p824_p13 }
  0x2c   : > { %832 = shalt.err (!%p829_p4)
}
  0x2d   : > { %s833_s28 = scalar_lea.vmem %s149_s7, 256  ;;  %p841_p6 = scmp.lt.s32.totalorder %s149_s7, %s149_s7 }
  0x2e   : > { %p834_p2 = scmp.ne.s32.totalorder %s149_s7, %s833_s28  ;;  %p842_p3 = scmp.lt.s32.totalorder %s833_s28, %s833_s28 }
  0x30   : > { %p836_p12 = pnand %p834_p2, %p822_p9  ;;  %p843_p0 = por %p842_p3, %p841_p6 }
  0x32   : > { %p837_p10 = pneg %p836_p12 }
  0x34   : > { %p844_p7 = pnand %p843_p0, %p837_p10 }
  0x36   : > { %847 = shalt.err (!%p844_p7)
}
  0x37   : > { %s1007_s10 = smov 128   ;;  %s1008_s25 = smov 8  }
  0x38   : > { %705 = dma.hbm_to_vmem [thread:$0]  (!%p1137_p5), %s1384_s1, 256, %s149_s7, [#allocation4], %s1007_s10, %s1007_s10, %s1008_s25  }
  0x39   : > { %s29_s23 = sadd.s32 1, %s996_s20  ;;  %s32_s24 = sadd.s32 1, %s1000_s21 }
  0x3a   : > { %p30_p3 = scmp.ge.s32.totalorder %s29_s23, 2  ;;  %s162_s6 = sand.u32 1, %s984_s17  }
  0x3b   : > { %s637_s28 = sshll.u32 %s162_s6, 8  ;;  %s639_s8 = sshll.u32 %s1000_s21, 1 }
  0x3c   : > { %s1411_s23 = smov (%p30_p3, %s29_s23), 0  ;;  %s1413_s24 = smov (!%p30_p3, %s32_s24), %s1000_s21 }
  0x3d   : > { %1385 = sst [smem:[#allocation15_spill]] %s1411_s23  ;;  %s78_s27 = ssub.s32 %s996_s20, %s1411_s23 }
  0x3e   : > { %p34_p6 = scmp.ge.s32.totalorder %s1413_s24, 2  ;;  %s660_s4 = sshll.u32 %s996_s20, 6 }
  0x3f   : > { %s166_s11 = scalar_lea.vmem [#allocation6], %s637_s28  ;;  %s173_s10 = sadd.s32 %s660_s4, %s639_s8 }
  0x40   : > { %s176_s7 = sshll.u32 %s166_s11, 4  ;;  %s1415_s24 = smov (%p34_p6, %s1413_s24), 0  ;;  %s1175_s7 = int_to_ptr.vmem [resolvable:$true] %s176_s7 }
  0x41   : > { %1386 = sst [smem:[#allocation16_spill]] %s1415_s24  ;;  %s79_s25 = ssub.s32 %s1000_s21, %s1415_s24 }
  0x42   : > { %s641_s15 = sshll.u32 %s173_s10, 7  ;;  %s80_s1 = sor.u32 %s79_s25, %s78_s27 }
  0x43   : > { %p107_p10 = scmp.eq.s32.totalorder %s79_s25, 0  ;;  %p81_p12 = scmp.eq.s32.totalorder %s80_s1, 0 }
  0x44   : > { %s1182_s22 = scalar_lea.hbm %s1358_s2, %s641_s15  ;;  %s1387_s28 = sadd.s32 1, %s972_s14 }
  0x45   : > { %s1187_s11 = scalar_select %p107_p10, %s972_s14, %s1387_s28  }
  0x46   : > { %s1388_s4 = sadd.s32 1, %s984_s17  ;;  %s1194_s24 = scalar_lea.sflag [#allocation7], %s162_s6 }
  0x47   : > { %s1192_s8 = scalar_select %p81_p12, %s984_s17, %s1388_s4  }
  0x48   : > { %s848_s27 = scalar_lea.hbm %s1182_s22, 4096  ;;  %p1389_p5 = scmp.ne.s32.totalorder %s1383_s9, 0 }
  0x49   : > { %p849_p0 = scmp.ne.s32.totalorder %s1182_s22, %s848_s27  ;;  %s853_s23 = scalar_lea.hbm %s1358_s2, 16384 }
  0x4a   : > { %p850_p7 = pneg %p1389_p5  ;;  %p854_p11 = scmp.lt.u32.totalorder %s1182_s22, %s1358_s2 }
  0x4b   : > { %p855_p13 = scmp.lt.u32.totalorder %s853_s23, %s848_s27  ;;  %p857_p4 = scmp.lt.u32.totalorder %s848_s27, %s1182_s22 }
  0x4c   : > { %p851_p8 = pnand %p850_p7, %p849_p0 }
  0x4d   : > { %p856_p1 = por %p855_p13, %p854_p11 }
  0x4e   : > { %p852_p9 = pneg %p851_p8 }
  0x4f   : > { %p858_p2 = por %p857_p4, %p856_p1 }
  0x51   : > { %p859_p3 = pnand %p858_p2, %p852_p9 }
  0x53   : > { %862 = shalt.err (!%p859_p3)
}
  0x54   : > { %s863_s6 = scalar_lea.vmem %s1175_s7, 4096  ;;  %s1009_s15 = smov [#allocation6]  }
  0x55   : > { %p864_p6 = scmp.ne.s32.totalorder %s1175_s7, %s863_s6  ;;  %s868_s28 = sshll.u32 %s1009_s15, 4  ;;  %s869_s28 = int_to_ptr.vmem [resolvable:$false] %s868_s28 }
  0x56   : > { %s870_s4 = scalar_lea.vmem %s869_s28, 8192  ;;  %p871_p0 = scmp.lt.s32.totalorder %s1175_s7, %s869_s28 }
  0x57   : > { %p866_p10 = pnand %p864_p6, %p850_p7  ;;  %p872_p8 = scmp.lt.s32.totalorder %s870_s4, %s863_s6 }
  0x59   : > { %p867_p12 = pneg %p866_p10  ;;  %p873_p11 = por %p872_p8, %p871_p0 }
  0x5b   : > { %p874_p13 = pnand %p873_p11, %p867_p12 }
  0x5d   : > { %877 = shalt.err (!%p874_p13)
}
  0x5e   : > { %s1010_s27 = smov 512   ;;  %s1011_s1 = smov 256  }
  0x5f   : > { %s1012_s12 = smov 16   ;;  %p1390_p7 = scmp.ne.s32.totalorder %s1381_s5, 0 }
  0x60   : > { %709 = dma.hbm_to_vmem [thread:$0]  (!%p1389_p5), %s1182_s22, 4096, %s1175_s7, %s1194_s24, %s1010_s27, %s1011_s1, %s1012_s12  }
  0x61   : > { %188 = sbr.rel (%p1390_p7) target bundleno = 536 (0x218), region = 32  ;;  %p1391_p9 = scmp.ne.s32.totalorder (!%p1390_p7), %s1375_s26, 0 }
  0x68   : > { %951 = dma.done.wait (%p1391_p9), [#allocation4], 256  }
  0x69   : > { %953 = vsyncadd (%p1391_p9), [#allocation4], 4294967040  ;;  %s194_s23 = sand.u32 1, %s980_s16   ;;  %p1392_p1 = scmp.ne.s32.totalorder %s1377_s29, 0 }
  0x6a   : > { %s644_s10 = sshll.u32 %s194_s23, 8  ;;  %s195_s25 = scalar_lea.sflag [#allocation7], %s194_s23 }
  0x6b   : > { %s1229_s6 = scalar_lea.vmem [#allocation6], %s644_s10 }
  0x6c   : > { %955 = dma.done.wait (%p1392_p1), %s195_s25, 4096  }
  0x6d   : > { %957 = vsyncadd (%p1392_p1), %s195_s25, 4294963200  ;;  %s218_s22 = sand.u32 1, %s968_s13   ;;  %v1013_v0 = vmov 0.0   ;;  %v225_v1 = vld [vmem:[%s1229_s6 + $0x8] sm:$0xff]  ;;  %v227_v2 = vld [vmem:[%s1229_s6 + $0x18] sm:$0xff]  ;;  %s646_s29 = sshll.u32 %s988_s18, 3 }
  0x6e   : > { %s1238_s26 = sshll.u32 %s218_s22, 4  ;;  %323 = vmatprep.mubr.f32.mxu0 %v1013_v0  ;;  %v224_v3 = vld [vmem:[%s1229_s6] sm:$0xff]  ;;  %v662_v4 = vpack.c.bf16 %v227_v2, %v225_v1  ;;  %v331_v5 = vmul.f32 %v225_v1, %v225_v1  ;;  %v333_v6 = vmul.f32 %v227_v2, %v227_v2  ;;  %v226_v7 = vld [vmem:[%s1229_s6 + $0x10] sm:$0xff]  ;;  %v229_v9 = vld [vmem:[%s1229_s6 + $0x28] sm:$0xff]  ;;  %s257_s5 = scalar_lea.vmem [#allocation3], %s646_s29 }
  0x6f   : > { %v330_v8 = vmul.f32 %v224_v3, %v224_v3  ;;  %v231_v10 = vld [vmem:[%s1229_s6 + $0x38] sm:$0xff]  ;;  %v664_v11 = vpack.c.bf16 %v226_v7, %v224_v3  ;;  %v332_v12 = vmul.f32 %v226_v7, %v226_v7  ;;  %v335_v14 = vmul.f32 %v229_v9, %v229_v9  ;;  %v228_v15 = vld [vmem:[%s1229_s6 + $0x20] sm:$0xff]  ;;  %v230_v16 = vld [vmem:[%s1229_s6 + $0x30] sm:$0xff]  ;;  %s1274_s9 = scalar_lea.vmem [#allocation8], %s1238_s26  ;;  %p647_p5 = scmp.ne.s32.totalorder %s988_s18, 0 }
  0x70   : > { %v666_v13 = vpack.c.bf16 %v231_v10, %v229_v9  ;;  %v233_v17 = vld [vmem:[%s1229_s6 + $0x48] sm:$0xff]  ;;  %663 = vmatprep.subr.bf16.mxu0 %v662_v4  ;;  %v383_v18 = vadd.f32 %v333_v6, %v331_v5  ;;  %v337_v19 = vmul.f32 %v231_v10, %v231_v10  ;;  %v334_v20 = vmul.f32 %v228_v15, %v228_v15  ;;  %v235_v21 = vld [vmem:[%s1229_s6 + $0x58] sm:$0xff]  ;;  %v232_v28 = vld [vmem:[%s1229_s6 + $0x40] sm:$0xff] }
  0x71   : > { %665 = vmatpush1.bf16.msra.mxu0 %v664_v11  ;;  %v362_v22 = vadd.f32 %v332_v12, %v330_v8  ;;  %v668_v23 = vpack.c.bf16 %v230_v16, %v228_v15  ;;  %v336_v24 = vmul.f32 %v230_v16, %v230_v16  ;;  %v670_v26 = vpack.c.bf16 %v235_v21, %v233_v17  ;;  %v234_v29 = vld [vmem:[%s1229_s6 + $0x50] sm:$0xff]  ;;  %v237_v32 = vld [vmem:[%s1229_s6 + $0x68] sm:$0xff]  ;;  %v239_v33 = vld [vmem:[%s1229_s6 + $0x78] sm:$0xff] }
  0x72   : > { %667 = vmatprep.subr.bf16.mxu0 %v666_v13  ;;  %v384_v25 = vadd.f32 %v383_v18, %v335_v14  ;;  %v339_v27 = vmul.f32 %v233_v17, %v233_v17  ;;  %v338_v31 = vmul.f32 %v232_v28, %v232_v28  ;;  %v341_v35 = vmul.f32 %v235_v21, %v235_v21  ;;  %v236_v42 = vld [vmem:[%s1229_s6 + $0x60] sm:$0xff]  ;;  %v238_v43 = vld [vmem:[%s1229_s6 + $0x70] sm:$0xff]  ;;  %v241_v46 = vld [vmem:[%s1229_s6 + $0x88] sm:$0xff] }
  0x73   : > { %v363_v30 = vadd.f32 %v362_v22, %v334_v20  ;;  %v672_v37 = vpack.c.bf16 %v234_v29, %v232_v28  ;;  %v340_v38 = vmul.f32 %v234_v29, %v234_v29  ;;  %v674_v40 = vpack.c.bf16 %v239_v33, %v237_v32  ;;  %v243_v47 = vld [vmem:[%s1229_s6 + $0x98] sm:$0xff]  ;;  %v240_v56 = vld [vmem:[%s1229_s6 + $0x80] sm:$0xff]  ;;  %v242_v57 = vld [vmem:[%s1229_s6 + $0x90] sm:$0xff] }
  0x74   : > { %v385_v34 = vadd.f32 %v384_v25, %v337_v19  ;;  %v343_v41 = vmul.f32 %v237_v32, %v237_v32  ;;  %v342_v45 = vmul.f32 %v236_v42, %v236_v42  ;;  %v345_v49 = vmul.f32 %v239_v33, %v239_v33  ;;  %v245_v60 = vld [vmem:[%s1229_s6 + $0xa8] sm:$0xff]  ;;  %v247_v61 = vld [vmem:[%s1229_s6 + $0xb8] sm:$0xff]  ;;  %v244_v6 = vld [vmem:[%s1229_s6 + $0xa0] sm:$0xff] }
  0x75   : > { %669 = vmatpush1.bf16.msra.mxu0 %v668_v23  ;;  %v364_v36 = vadd.f32 %v363_v30, %v336_v24  ;;  %v676_v51 = vpack.c.bf16 %v238_v43, %v236_v42  ;;  %v344_v52 = vmul.f32 %v238_v43, %v238_v43  ;;  %v678_v54 = vpack.c.bf16 %v243_v47, %v241_v46  ;;  %v246_v7 = vld [vmem:[%s1229_s6 + $0xb0] sm:$0xff]  ;;  %v249_v10 = vld [vmem:[%s1229_s6 + $0xc8] sm:$0xff]  ;;  %v251_v11 = vld [vmem:[%s1229_s6 + $0xd8] sm:$0xff] }
  0x76   : > { %671 = vmatprep.subr.bf16.mxu0 %v670_v26  ;;  %v386_v39 = vadd.f32 %v385_v34, %v339_v27  ;;  %v347_v55 = vmul.f32 %v241_v46, %v241_v46  ;;  %v346_v59 = vmul.f32 %v240_v56, %v240_v56  ;;  %v349_v63 = vmul.f32 %v243_v47, %v243_v47  ;;  %v248_v20 = vld [vmem:[%s1229_s6 + $0xc0] sm:$0xff]  ;;  %v250_v21 = vld [vmem:[%s1229_s6 + $0xd0] sm:$0xff]  ;;  %v253_v24 = vld [vmem:[%s1229_s6 + $0xe8] sm:$0xff] }
  0x77   : > { %v365_v44 = vadd.f32 %v364_v36, %v338_v31  ;;  %v680_v1 = vpack.c.bf16 %v242_v57, %v240_v56  ;;  %v348_v2 = vmul.f32 %v242_v57, %v242_v57  ;;  %v682_v4 = vpack.c.bf16 %v247_v61, %v245_v60  ;;  %v255_v25 = vld [vmem:[%s1229_s6 + $0xf8] sm:$0xff]  ;;  %v252_v34 = vld [vmem:[%s1229_s6 + $0xe0] sm:$0xff] }
  0x78   : > { %v387_v48 = vadd.f32 %v386_v39, %v341_v35  ;;  %v351_v5 = vmul.f32 %v245_v60, %v245_v60  ;;  %v350_v9 = vmul.f32 %v244_v6, %v244_v6  ;;  %v353_v13 = vmul.f32 %v247_v61, %v247_v61  ;;  %v254_v35 = vld [vmem:[%s1229_s6 + $0xf0] sm:$0xff]  ;;  %v258_v47 = vld [vmem:[%s257_s5] sm:$0xff] }
  0x79   : > { %673 = vmatpush1.bf16.msra.mxu0 %v672_v37  ;;  %v366_v50 = vadd.f32 %v365_v44, %v340_v38  ;;  %v684_v15 = vpack.c.bf16 %v246_v7, %v244_v6  ;;  %v352_v16 = vmul.f32 %v246_v7, %v246_v7  ;;  %v686_v18 = vpack.c.bf16 %v251_v11, %v249_v10 }
  0x7a   : > { %675 = vmatprep.subr.bf16.mxu0 %v674_v40  ;;  %v388_v53 = vadd.f32 %v387_v48, %v343_v41  ;;  %v355_v19 = vmul.f32 %v249_v10, %v249_v10  ;;  %v354_v23 = vmul.f32 %v248_v20, %v248_v20  ;;  %v357_v27 = vmul.f32 %v251_v11, %v251_v11 }
  0x7b   : > { %v367_v58 = vadd.f32 %v366_v50, %v342_v45  ;;  %v688_v29 = vpack.c.bf16 %v250_v21, %v248_v20  ;;  %v356_v30 = vmul.f32 %v250_v21, %v250_v21  ;;  %v690_v32 = vpack.c.bf16 %v255_v25, %v253_v24 }
  0x7c   : > { %v389_v62 = vadd.f32 %v388_v53, %v345_v49  ;;  %v359_v33 = vmul.f32 %v253_v24, %v253_v24  ;;  %v358_v37 = vmul.f32 %v252_v34, %v252_v34  ;;  %v361_v39 = vmul.f32 %v255_v25, %v255_v25 }
  0x7d   : > { %677 = vmatpush1.bf16.msra.mxu0 %v676_v51  ;;  %v368_v0 = vadd.f32 %v367_v58, %v344_v52  ;;  %v692_v41 = vpack.c.bf16 %v254_v35, %v252_v34  ;;  %v360_v42 = vmul.f32 %v254_v35, %v254_v35 }
  0x7e   : > { %679 = vmatprep.subr.bf16.mxu0 %v678_v54  ;;  %v390_v3 = vadd.f32 %v389_v62, %v347_v55  ;;  %v416_v62 = vlaneseq (!%p647_p5) }
  0x7f   : > { %v369_v8 = vadd.f32 %v368_v0, %v346_v59 }
  0x80   : > { %v391_v12 = vadd.f32 %v390_v3, %v349_v63  ;;  %v1014_v63 = vmov (!%p647_p5), 1966171168   ;;  %vm430_vm0 = vcmp.lt.s32.totalorder (!%p647_p5), %v416_v62, 256 }
  0x81   : > { %681 = vmatpush1.bf16.msra.mxu0 %v680_v1  ;;  %v370_v14 = vadd.f32 %v369_v8, %v348_v2  ;;  %v414_v0 = vunpack.c.l.s4 (!%p647_p5), %v1014_v63  ;;  %v417_v1 = vshrl.u32 (!%p647_p5), %v416_v62, 7 }
  0x82   : > { %683 = vmatprep.subr.bf16.mxu0 %v682_v4  ;;  %v392_v17 = vadd.f32 %v391_v12, %v351_v5 }
  0x83   : > { %v371_v22 = vadd.f32 %v370_v14, %v350_v9  ;;  %v415_v3 = vunpack.c.0.s8 (!%p647_p5), %v414_v0 }
  0x84   : > { %v393_v26 = vadd.f32 %v392_v17, %v353_v13 }
  0x85   : > { %685 = vmatpush1.bf16.msra.mxu0 %v684_v15  ;;  %v372_v28 = vadd.f32 %v371_v22, %v352_v16  ;;  %v418_v4 = vsub.s32 (!%p647_p5), %v415_v3, %v417_v1 }
  0x86   : > { %687 = vmatprep.subr.bf16.mxu0 %v686_v18  ;;  %v394_v31 = vadd.f32 %v393_v26, %v355_v19 }
  0x87   : > { %v373_v36 = vadd.f32 %v372_v28, %v354_v23 }
  0x88   : > { %v395_v38 = vadd.f32 %v394_v31, %v357_v27 }
  0x89   : > { %689 = vmatpush1.bf16.msra.mxu0 %v688_v29  ;;  %v374_v40 = vadd.f32 %v373_v36, %v356_v30 }
  0x8a   : > { %691 = vmatprep.subr.bf16.mxu0 %v690_v32  ;;  %v396_v43 = vadd.f32 %v395_v38, %v359_v33 }
  0x8b   : > { %v375_v44 = vadd.f32 %v374_v40, %v358_v37 }
  0x8c   : > { %v397_v45 = vadd.f32 %v396_v43, %v361_v39 }
  0x8d   : > { %693 = vmatpush1.bf16.msra.mxu0 %v692_v41  ;;  %v376_v46 = vadd.f32 %v375_v44, %v360_v42 }
  0x8e   : > { %v398_v48 = vrot.slane %v397_v45, 4 }
  0x8f   : > { %v377_v49 = vrot.slane %v376_v46, 4 }
  0x90   : > { %v399_v50 = vadd.f32 %v398_v48, %v397_v45  ;;  %324 = vmatmul.mubr.f32.vlgmr.msra.gmra.mrb[0].mxu0 %v258_v47 }
  0x91   : > { %v378_v51 = vadd.f32 %v377_v49, %v376_v46 }
  0x92   : > { %v400_v52 = vrot.slane %v399_v50, 2 }
  0x93   : > { %v379_v53 = vrot.slane %v378_v51, 2 }
  0x94   : > { %v401_v54 = vadd.f32 %v400_v52, %v399_v50 }
  0x95   : > { %v380_v55 = vadd.f32 %v379_v53, %v378_v51 }
  0x96   : > { %v402_v56 = vrot.slane %v401_v54, 1 }
  0x97   : > { %v381_v57 = vrot.slane %v380_v55, 1 }
  0x98   : > { %v403_v58 = vadd.f32 %v402_v56, %v401_v54 }
  0x99   : > { %v382_v59 = vadd.f32 %v381_v57, %v380_v55 }
  0x9b   : > { %v412_v2 = vcombine.low (!%p647_p5), %v382_v59, %v403_v58 }
  0x9d   : > { %v419_v5 = vrot.slane (!%p647_p5), %v412_v2, %v418_v4 }
  0x9f   : > { %v426_v6 = vrot.slane (!%p647_p5), %v419_v5, %v418_v4 }
  0xa1   : > { %432 = vst.msk [vmem:[#allocation2] sm:$0x3] (!%p647_p5), %vm430_vm0, %v426_v6 }
 0x15e   : > { %407 = sbr.rel (%p647_p5) target bundleno = 358 (0x166), region = 44 }
 0x163   : > { %v325_v60 = vpop.f32.mrb[0].mxu0 }
 0x164   : > { %v327_v61 = vpop.f32.mrb[1].mxu0  ;;  %408 = vst [vmem:[%s1274_s9] sm:$0xff] (!%p647_p5), %v325_v60 }
 0x165   : > { %409 = vst [vmem:[%s1274_s9 + $0x8] sm:$0xff] %v327_v61 }
 0x166 PF: > { %p648_p4 = scmp.le.s32.totalorder %s988_s18, 0 }
 0x167   : > { %v450_v9 = vlaneseq (!%p648_p4)  ;;  %v1015_v12 = vmov (!%p648_p4), 1966171168   ;;  %v446_v15 = vcombine.low (!%p648_p4), %v382_v59, %v403_v58  ;;  %v443_v19 = vld [vmem:[#allocation2] sm:$0x3] (!%p648_p4) }
 0x168   : > { %436 = sbr.rel (%p648_p4) target bundleno = 373 (0x175), region = 48  ;;  %v448_v13 = vunpack.c.l.s4 (!%p648_p4), %v1015_v12 }
 0x169   : > { %v451_v14 = vshrl.u32 (!%p648_p4), %v450_v9, 7  ;;  %vm465_vm1 = vcmp.lt.s32.totalorder (!%p648_p4), %v450_v9, 256 }
 0x16a   : > { %v449_v16 = vunpack.c.0.s8 (!%p648_p4), %v448_v13 }
 0x16c   : > { %v437_v7 = vld [vmem:[%s1274_s9] sm:$0xff] (!%p648_p4)  ;;  %v438_v8 = vld [vmem:[%s1274_s9 + $0x8] sm:$0xff] (!%p648_p4)  ;;  %v452_v17 = vsub.s32 (!%p648_p4), %v449_v16, %v451_v14 }
 0x16d   : > { %v439_v10 = vadd.f32 (!%p648_p4), %v437_v7, %v325_v60  ;;  %v440_v11 = vadd.f32 (!%p648_p4), %v438_v8, %v327_v61 }
 0x16e   : > { %v453_v18 = vrot.slane (!%p648_p4), %v446_v15, %v452_v17 }
 0x16f   : > { %441 = vst [vmem:[%s1274_s9] sm:$0xff] %v439_v10  ;;  %442 = vst [vmem:[%s1274_s9 + $0x8] sm:$0xff] %v440_v11 }
 0x170   : > { %v460_v20 = vrot.slane %v453_v18, %v452_v17 }
 0x172   : > { %v462_v21 = vadd.f32 %v460_v20, %v443_v19 }
 0x174   : > { %467 = vst.msk [vmem:[#allocation2] sm:$0x3] %vm465_vm1, %v462_v21 }
 0x175 PF: > { %p649_p2 = scmp.ne.s32.totalorder %s988_s18, 1 }
 0x176   : > { %v501_v22 = vld [vmem:[%s1356_s0] sm:$0xff] (!%p649_p2)  ;;  %v1016_v23 = vmov (!%p649_p2), 0   ;;  %v478_v26 = vlaneseq (!%p649_p2)  ;;  %s652_s18 = sshll.u32 (!%p649_p2), %s992_s19, 8  ;;  %v1017_v47 = vmov (!%p649_p2), 0.0  }
 0x177   : > { %471 = sbr.rel (%p649_p2) target bundleno = 511 (0x1ff), region = 52  ;;  %817 = vset.pattern.permute.xlu0 (!%p649_p2), %v1016_v23  ;;  %v498_v39 = vstv (!%p649_p2), %s652_s18 }
 0x178   : > { %503 = vperm.xlu0 (!%p649_p2), %817, %v501_v22   ;;  %v479_v27 = vshrl.u32 (!%p649_p2), %v478_v26, 7  ;;  %v496_v33 = vand.u32 (!%p649_p2), 127, %v478_v26 }
 0x17a   : > { %v480_v28 = vsub.s32 (!%p649_p2), 0, %v479_v27  ;;  %v484_v29 = vsub.s32 (!%p649_p2), 1, %v479_v27  ;;  %v497_v38 = vadd.s32 (!%p649_p2), 128, %v496_v33  ;;  %v499_v42 = vadd.s32 (!%p649_p2), %v498_v39, %v496_v33 }
 0x17b   : > { %v472_v24 = vld [vmem:[#allocation2] sm:$0x3] (!%p649_p2) }
 0x17c   : > { %v473_v25 = vmax.f32 (!%p649_p2), %v472_v24, 1e-30  ;;  %v475_v34 = vld [vmem:[%s1274_s9] sm:$0xff] (!%p649_p2)  ;;  %v476_v35 = vld [vmem:[%s1274_s9 + $0x8] sm:$0xff] (!%p649_p2)  ;;  %v500_v43 = vadd.s32 (!%p649_p2), %v498_v39, %v497_v38 }
 0x17e   : > { %818 = vrsqrt.f32 %v473_v25 }
 0x188   : > { %v819_v30 = vpop.eup %818 }
 0x189   : > { %v481_v31 = vrot.slane %v819_v30, %v480_v28  ;;  %v485_v32 = vrot.slane %v819_v30, %v484_v29 }
 0x18b   : > { %v488_v36 = vmul.f32 %v481_v31, %v475_v34  ;;  %v489_v37 = vmul.f32 %v485_v32, %v476_v35 }
 0x18d   : > { %v650_v40 = vclamps-f32 %v488_v36, 1.0  ;;  %v651_v41 = vclamps-f32 %v489_v37, 1.0 }
 0x18f   : > { %v511_v45 = vmul.f32 30.0, %v650_v40  ;;  %v512_v46 = vmul.f32 30.0, %v651_v41 }
 0x1f7   : > { %v504_v44 = vpop.permute.xlu0 %503 }
 0x1f8   : > { %vm505_vm2 = vcmp.eq.s32.totalorder %v499_v42, %v504_v44  ;;  %vm506_vm3 = vcmp.eq.s32.totalorder %v500_v43, %v504_v44 }
 0x1f9   : > { %v653_v48 = vsel %vm505_vm2, 1.0, %v1017_v47  ;;  %v654_v49 = vsel %vm506_vm3, 1.0, %v1017_v47 }
 0x1fa   : > { %v513_v50 = vmul.f32 10.5, %v653_v48  ;;  %v514_v51 = vmul.f32 10.5, %v654_v49 }
 0x1fc   : > { %v515_v52 = vsub.f32 %v511_v45, %v513_v50  ;;  %v516_v53 = vsub.f32 %v512_v46, %v514_v51 }
 0x1fe   : > { %517 = vst [vmem:[%s1274_s9] sm:$0xff] %v515_v52  ;;  %518 = vst [vmem:[%s1274_s9 + $0x8] sm:$0xff] %v516_v53 }
 0x1ff PF: > { %s661_s15 = sshll.u32 %s992_s19, 8  ;;  %s534_s1 = sshll.u32 %s1274_s9, 4  ;;  %s535_s1 = int_to_ptr.vmem [resolvable:$true] %s534_s1 }
 0x200   : > { %s1297_s27 = scalar_lea.hbm %s1359_s3, %s661_s15  ;;  %s520_s12 = scalar_lea.sflag [#allocation5], %s218_s22 }
 0x201   : > { %s878_s23 = scalar_lea.vmem %s535_s1, 256  ;;  %p1393_p6 = scmp.ne.s32.totalorder %s1378_s30, 0 }
 0x202   : > { %p879_p3 = scmp.ne.s32.totalorder %s535_s1, %s878_s23  ;;  %s1018_s10 = smov [#allocation8]  }
 0x203   : > { %s882_s25 = sshll.u32 %s1018_s10, 4  ;;  %s883_s25 = int_to_ptr.vmem [resolvable:$false] %s882_s25 }
 0x204   : > { %p880_p10 = pnand %p879_p3, %p1393_p6  ;;  %s884_s6 = scalar_lea.vmem %s883_s25, 512 }
 0x205   : > { %p885_p0 = scmp.lt.s32.totalorder %s535_s1, %s883_s25  ;;  %p886_p8 = scmp.lt.s32.totalorder %s884_s6, %s878_s23 }
 0x206   : > { %p881_p12 = pneg %p880_p10 }
 0x207   : > { %p887_p11 = por %p886_p8, %p885_p0 }
 0x209   : > { %p888_p13 = pnand %p887_p11, %p881_p12 }
 0x20b   : > { %891 = shalt.err (!%p888_p13)
}
 0x20c   : > { %s892_s19 = scalar_lea.hbm %s1297_s27, 256  ;;  %s896_s29 = scalar_lea.hbm %s1359_s3, 512 }
 0x20d   : > { %p893_p7 = scmp.ne.s32.totalorder %s1297_s27, %s892_s19  ;;  %p897_p5 = scmp.lt.u32.totalorder %s1297_s27, %s1359_s3 }
 0x20e   : > { %p898_p4 = scmp.lt.u32.totalorder %s896_s29, %s892_s19  ;;  %p900_p3 = scmp.lt.u32.totalorder %s892_s19, %s1297_s27 }
 0x20f   : > { %p894_p9 = pnand %p893_p7, %p1393_p6 }
 0x210   : > { %p899_p2 = por %p898_p4, %p897_p5 }
 0x211   : > { %p895_p1 = pneg %p894_p9 }
 0x212   : > { %p901_p10 = por %p900_p3, %p899_p2 }
 0x214   : > { %p902_p12 = pnand %p901_p10, %p895_p1 }
 0x216   : > { %905 = shalt.err (!%p902_p12)
}
 0x217   : > { %700 = dma.vmem_to_hbm [thread:$0]  (%p1393_p6), %s535_s1, 256, %s1297_s27, %s520_s12  }
 0x218 PF: > { %s1394_s24 = sld [smem:[#allocation13_spill]]  ;;  %s1395_s7 = sld [smem:[#allocation12_spill]] }
 0x219   : > { %s1396_s18 = sld [smem:[#allocation14_spill]] }
 0x21e   : > { %p717_p0 = scmp.ge.s32.totalorder %s1394_s24, 2  ;;  %s546_s15 = sand.u32 1, %s1395_s7  }
 0x21f   : > { %p1397_p8 = scmp.ne.s32.totalorder %s1396_s18, 0  ;;  %s547_s28 = scalar_lea.sflag [#allocation5], %s546_s15 }
 0x221   : > { %p711_p11 = pnand %p717_p0, %p1397_p8 }
 0x223   : > { %959 = dma.done.wait (!%p711_p11), %s547_s28, 256  }
 0x224   : > { %961 = vsyncadd (!%p711_p11), %s547_s28, 4294967040  ;;  %s20_s22 = sadd.s32 1, %s1394_s24   ;;  %s1398_s30 = sld [smem:[#allocation15_spill]] }
 0x225   : > { %p17_p13 = scmp.ge.s32.totalorder %s20_s22, 6   ;;  %s1399_s4 = sld [smem:[#allocation16_spill]] }
 0x226   : > { %s1400_s12 = smov %s968_s13  ;;  %s1401_s13 = smov %s972_s14 }
 0x227   : > { %s1402_s14 = smov %s1187_s11  ;;  %s1403_s15 = smov %s980_s16 }
 0x228   : > { %s1404_s16 = smov %s984_s17  ;;  %s1405_s17 = smov %s1192_s8 }
 0x229   : > { %s1406_s18 = smov %s996_s20  ;;  %s1407_s19 = smov %s1000_s21 }
 0x22a   : > { %s1408_s20 = smov %s1398_s30  ;;  %19 = sbr.rel (!%p17_p13) target bundleno = 12 (0xc), region = 95 }
 0x22b   : > { %s1409_s21 = smov %s1399_s4 }
 0x231   :  { %552 = vsyncpa [#allocation4], 1 }
 0x232   :  { %554 = vsyncpa [#allocation4 + $0x1], 1 }
 0x233   :  { %555 = vsyncpa [#allocation7], 1 }
 0x234   :  { %557 = vsyncpa [#allocation7 + $0x1], 1 }
 0x235   :  { %558 = vsyncpa [#allocation5], 1 }
 0x236   :  { %560 = vsyncpa [#allocation5 + $0x1], 1 }

</bundles_post_ra>
